<compile_context>
chip_gen: v6e
topology: v6e:2x2x1
jax: 0.10.0
libtpu: 0.0.40
codegen_flags: <defaults>
</compile_context>

<pallas_src>
import functools
import numpy as np
import jax
import jax.numpy as jnp
from jax.experimental import pallas as pl
from jax.experimental.pallas import tpu as pltpu


# ---------------------------- Hardware-aware knobs ----------------------------

try:
    _VMEM_CAP = int(pltpu.get_tpu_info().vmem_capacity_bytes)
except Exception:  # pragma: no cover - fallback when the query is unavailable
    _VMEM_CAP = None

# Leave ~25% headroom below physical VMEM; None -> compiler default.
_VMEM_LIMIT = None if _VMEM_CAP is None else int(_VMEM_CAP * 3 // 4)
# 512-token tiles on 128 MiB VMEM parts (v5e/v6e), 256 on 64 MiB (v7x).
_TOKEN_TILE_MAX = 512 if (_VMEM_CAP or 0) >= 100 * 1024 * 1024 else 256


def _token_tile(M):
    return M if M <= _TOKEN_TILE_MAX else _TOKEN_TILE_MAX


def _cparams(dims):
    return pltpu.CompilerParams(dimension_semantics=dims,
                                vmem_limit_bytes=_VMEM_LIMIT)


# ---------------------------- Pallas kernels ----------------------------

def _proj_kernel(x_ref, w_ref, b_ref, o_ref):
    # One fused projection: x(f32) -> bf16, single dot against the concatenated
    # weight slab (bf16), f32 accumulate, bf16 lane-dense output store.
    x = x_ref[...].astype(jnp.bfloat16)
    y = jnp.dot(x, w_ref[...], preferred_element_type=jnp.float32) + b_ref[...]
    o_ref[...] = y.astype(jnp.bfloat16)


def _mha_fused_kernel(q_ref, k_ref, v_ref, m_ref, wfc_ref, bfc_ref, res_ref,
                      g_ref, bt_ref, npm_ref, o_ref, a_ref, *, n_head, d_k, d_v):
    # One (batch, Lq-tile) step, all heads at once.
    # q_ref: (1, H, tq, d_k) bf16   k_ref/v_ref: (1, H, Lk, d) bf16
    # m_ref: (1, tq, Lk) int8       wfc_ref: (H, d_v, D) bf16
    q = q_ref[0]                               # (H, tq, d_k)
    k = k_ref[0]                               # (H, Lk, d_k)
    v = v_ref[0]                               # (H, Lk, d_v)

    # 1/temperature is folded into the Q projection weights in the wrapper.
    s = jnp.einsum('hqd,hkd->hqk', q, k,
                   preferred_element_type=jnp.float32)          # (H, tq, Lk)
    # Large finite negative instead of -inf so fully-masked rows stay finite.
    s = jnp.where(m_ref[0][None, :, :] != 0, -1e30, s)

    mx = jnp.max(s, axis=-1, keepdims=True)
    e = jnp.exp(s - mx)
    attn = e * pl.reciprocal(jnp.sum(e, axis=-1, keepdims=True), approx=True)
    # Returned attention probabilities (kept f32 to match module semantics;
    # could be bf16 / optional in production to halve this writeback).
    a_ref[...] = attn[:, None]

    ctx = jnp.einsum('hqk,hkd->hqd', attn.astype(jnp.bfloat16), v,
                     preferred_element_type=jnp.float32)        # (H, tq, d_v)

    # Fused output projection: per-head matmul against w_fc[h] and sum over
    # heads == concat(heads) @ W_fc, without any in-kernel head transpose.
    yh = jnp.einsum('hqe,hed->hqd', ctx.astype(jnp.bfloat16), wfc_ref[...],
                    preferred_element_type=jnp.float32)          # (H, tq, D)
    y = jnp.sum(yh, axis=0) + bfc_ref[...] + res_ref[0]          # (tq, D)

    mean = jnp.mean(y, axis=-1, keepdims=True)
    var = jnp.mean((y - mean) ** 2, axis=-1, keepdims=True)
    o_ref[0] = (((y - mean) * jax.lax.rsqrt(var + 1e-5)) * g_ref[...]
                + bt_ref[...]) * npm_ref[0]


def _ffn_kernel(x_ref, w1_ref, b1_ref, w2_ref, b2_ref, g_ref, bt_ref, m_ref, o_ref):
    # relu(x @ W1 + b1) @ W2 + b2 + x -> LayerNorm -> * non_pad_mask
    x = x_ref[...]                                               # f32 residual
    h = jnp.maximum(
        jnp.dot(x.astype(jnp.bfloat16), w1_ref[...],
                preferred_element_type=jnp.float32) + b1_ref[...], 0.0)
    y = (jnp.dot(h.astype(jnp.bfloat16), w2_ref[...],
                 preferred_element_type=jnp.float32) + b2_ref[...] + x)
    mean = jnp.mean(y, axis=-1, keepdims=True)
    var = jnp.mean((y - mean) ** 2, axis=-1, keepdims=True)
    o_ref[...] = (((y - mean) * jax.lax.rsqrt(var + 1e-5)) * g_ref[...]
                  + bt_ref[...]) * m_ref[...]


# ---------------------------- Pallas wrappers ----------------------------

def pallas_proj(x, w, b):
    """x: (M, K) f32; w: (K, N) bf16 (concatenated slab); b: (1, N) f32 -> (M, N) bf16."""
    M, K = x.shape
    N = w.shape[1]
    tm = _token_tile(M)
    return pl.pallas_call(
        _proj_kernel,
        out_shape=jax.ShapeDtypeStruct((M, N), jnp.bfloat16),
        grid=(pl.cdiv(M, tm),),
        in_specs=[pl.BlockSpec((tm, K), lambda i: (i, 0)),
                  pl.BlockSpec((K, N), lambda i: (0, 0)),      # resident weight
                  pl.BlockSpec((1, N), lambda i: (0, 0))],     # resident bias
        out_specs=pl.BlockSpec((tm, N), lambda i: (i, 0)),
        compiler_params=_cparams(("parallel",)),
    )(x, w, b)


def pallas_mha_fused(q, k, v, mask_i8, w_fc, b_fc, residual, gamma, beta, npm,
                     n_head, d_k, d_v):
    """q/k/v: (B, H, L, d) bf16; mask: (B, Lq, Lk) int8; residual: (B, Lq, D) f32."""
    B, H, Lq, _ = q.shape
    Lk = k.shape[2]
    D = w_fc.shape[2]
    tq = Lq if Lq <= 256 else 256
    nq = pl.cdiv(Lq, tq)

    kernel = functools.partial(_mha_fused_kernel, n_head=n_head, d_k=d_k, d_v=d_v)
    out, attn = pl.pallas_call(
        kernel,
        out_shape=(jax.ShapeDtypeStruct((B, Lq, D), jnp.float32),
                   jax.ShapeDtypeStruct((n_head, B, Lq, Lk), jnp.float32)),
        grid=(B, nq),
        in_specs=[
            pl.BlockSpec((1, H, tq, d_k), lambda b, i: (b, 0, i, 0)),
            pl.BlockSpec((1, H, Lk, d_k), lambda b, i: (b, 0, 0, 0)),
            pl.BlockSpec((1, H, Lk, d_v), lambda b, i: (b, 0, 0, 0)),
            pl.BlockSpec((1, tq, Lk), lambda b, i: (b, i, 0)),
            pl.BlockSpec((H, d_v, D), lambda b, i: (0, 0, 0)),   # resident W_fc
            pl.BlockSpec((1, D), lambda b, i: (0, 0)),
            pl.BlockSpec((1, tq, D), lambda b, i: (b, i, 0)),    # residual
            pl.BlockSpec((1, D), lambda b, i: (0, 0)),
            pl.BlockSpec((1, D), lambda b, i: (0, 0)),
            pl.BlockSpec((1, tq, 1), lambda b, i: (b, i, 0)),    # non-pad mask
        ],
        out_specs=(pl.BlockSpec((1, tq, D), lambda b, i: (b, i, 0)),
                   pl.BlockSpec((H, 1, tq, Lk), lambda b, i: (0, b, i, 0))),
        compiler_params=_cparams(("parallel", "parallel")),
    )(q, k, v, mask_i8, w_fc, b_fc, residual, gamma, beta, npm)
    return out, attn


def pallas_ffn(x, w1, b1, w2, b2, gamma, beta, npm_flat):
    M, D = x.shape
    d_inner = w1.shape[1]
    tm = _token_tile(M)
    return pl.pallas_call(
        _ffn_kernel,
        out_shape=jax.ShapeDtypeStruct((M, D), jnp.float32),
        grid=(pl.cdiv(M, tm),),
        in_specs=[pl.BlockSpec((tm, D), lambda i: (i, 0)),
                  pl.BlockSpec((D, d_inner), lambda i: (0, 0)),
                  pl.BlockSpec((1, d_inner), lambda i: (0, 0)),
                  pl.BlockSpec((d_inner, D), lambda i: (0, 0)),
                  pl.BlockSpec((1, D), lambda i: (0, 0)),
                  pl.BlockSpec((1, D), lambda i: (0, 0)),
                  pl.BlockSpec((1, D), lambda i: (0, 0)),
                  pl.BlockSpec((tm, 1), lambda i: (i, 0))],
        out_specs=pl.BlockSpec((tm, D), lambda i: (i, 0)),
        compiler_params=_cparams(("parallel",)),
    )(x, w1, b1, w2, b2, gamma, beta, npm_flat)


# ---------------------------- Module forward ----------------------------

def mha_forward(mp, q_in, kv_in, mask_i8, npm, n_head, d_k, d_v, self_attn):
    B, Lq, D = q_in.shape
    Lk = kv_in.shape[1]
    Hdk, Hdv = n_head * d_k, n_head * d_v

    xq = q_in.reshape(-1, D)
    if self_attn:
        # Single fused projection against [W_q*inv_t | W_k | W_v].
        slab = pallas_proj(xq, mp["w_qkv"], mp["b_qkv"])
        q2, k2, v2 = slab[:, :Hdk], slab[:, Hdk:2 * Hdk], slab[:, 2 * Hdk:]
    else:
        q2 = pallas_proj(xq, mp["w_q"], mp["b_q"])
        kv = pallas_proj(kv_in.reshape(-1, D), mp["w_kv"], mp["b_kv"])
        k2, v2 = kv[:, :Hdk], kv[:, Hdk:]

    # Layout plumbing (XLA): (M, H*d) -> (B, H, L, d) so the kernel never does
    # sub-128-lane per-head column slicing.
    q = q2.reshape(B, Lq, n_head, d_k).transpose(0, 2, 1, 3)
    k = k2.reshape(B, Lk, n_head, d_k).transpose(0, 2, 1, 3)
    v = v2.reshape(B, Lk, n_head, d_v).transpose(0, 2, 1, 3)

    out, attn = pallas_mha_fused(q, k, v, mask_i8, mp["w_fc"], mp["b_fc"],
                                 q_in, mp["ln_g"], mp["ln_b"], npm,
                                 n_head, d_k, d_v)
    # (n_head, B, Lq, Lk) -> head-major (n_head*B, Lq, Lk), matching PyTorch.
    return out, attn.reshape(n_head * B, Lq, Lk)


def pos_ffn_forward(fp, x, npm):
    B, L, D = x.shape
    out = pallas_ffn(x.reshape(-1, D), fp["w1"], fp["b1"], fp["w2"], fp["b2"],
                     fp["ln_g"], fp["ln_b"], npm.reshape(-1, 1))
    return out.reshape(B, L, D)


def decoder_layer_forward(prep, dec_input, enc_output, non_pad_mask,
                          slf_attn_mask, dec_enc_attn_mask, n_head, d_k, d_v):
    npm = non_pad_mask.astype(jnp.float32)               # (B, L, 1)
    slf_m = slf_attn_mask.astype(jnp.int8)               # int8 mask (not f32)
    enc_m = dec_enc_attn_mask.astype(jnp.int8)

    dec_output, dec_slf_attn = mha_forward(
        prep["slf"], dec_input, dec_input, slf_m, npm, n_head, d_k, d_v,
        self_attn=True)
    dec_output, dec_enc_attn = mha_forward(
        prep["enc"], dec_output, enc_output, enc_m, npm, n_head, d_k, d_v,
        self_attn=False)
    dec_output = pos_ffn_forward(prep["ffn"], dec_output, npm)
    return dec_output, dec_slf_attn, dec_enc_attn


# ---------------------------- Parameter preparation ----------------------------

def prepare_mha_params(p, n_head, d_k, d_v, self_attn):
    """Cast weights to bf16 once, concatenate Q/K/V slabs, fold 1/temperature
    into the Q projection, reshape W_fc per-head."""
    inv_t = 1.0 / float(np.power(d_k, 0.5))
    w_q = (p["w_qs"] * inv_t).astype(jnp.bfloat16)
    b_q = p["b_qs"] * inv_t
    w_k = p["w_ks"].astype(jnp.bfloat16)
    w_v = p["w_vs"].astype(jnp.bfloat16)
    d_model = p["w_fc"].shape[1]
    out = {
        "w_fc": p["w_fc"].astype(jnp.bfloat16).reshape(n_head, d_v, d_model),
        "b_fc": p["b_fc"].reshape(1, d_model),
        "ln_g": p["ln_g"].reshape(1, d_model),
        "ln_b": p["ln_b"].reshape(1, d_model),
    }
    if self_attn:
        out["w_qkv"] = jnp.concatenate([w_q, w_k, w_v], axis=1)
        out["b_qkv"] = jnp.concatenate([b_q, p["b_ks"], p["b_vs"]]).reshape(1, -1)
    else:
        out["w_q"] = w_q
        out["b_q"] = b_q.reshape(1, -1)
        out["w_kv"] = jnp.concatenate([w_k, w_v], axis=1)
        out["b_kv"] = jnp.concatenate([p["b_ks"], p["b_vs"]]).reshape(1, -1)
    return out


def prepare_ffn_params(p):
    d_model = p["w2"].shape[1]
    return {"w1": p["w1"].astype(jnp.bfloat16), "b1": p["b1"].reshape(1, -1),
            "w2": p["w2"].astype(jnp.bfloat16), "b2": p["b2"].reshape(1, -1),
            "ln_g": p["ln_g"].reshape(1, d_model),
            "ln_b": p["ln_b"].reshape(1, d_model)}


def prepare_decoder_params(params, n_head, d_k, d_v):
    return {
        "slf": prepare_mha_params(params["slf"], n_head, d_k, d_v, self_attn=True),
        "enc": prepare_mha_params(params["enc"], n_head, d_k, d_v, self_attn=False),
        "ffn": prepare_ffn_params(params["ffn"]),
    }


# ---------------------------- Pure-JAX reference ----------------------------

def _ref_mha(p, q_in, k_in, v_in, mask, n_head, d_k, d_v):
    sz_b, len_q, d_model = q_in.shape
    len_k = k_in.shape[1]
    residual = q_in
    q = (q_in.reshape(-1, d_model) @ p["w_qs"] + p["b_qs"]).reshape(sz_b, len_q, n_head, d_k)
    k = (k_in.reshape(-1, d_model) @ p["w_ks"] + p["b_ks"]).reshape(sz_b, len_k, n_head, d_k)
    v = (v_in.reshape(-1, d_model) @ p["w_vs"] + p["b_vs"]).reshape(sz_b, len_k, n_head, d_v)
    q = q.transpose(2, 0, 1, 3).reshape(-1, len_q, d_k)
    k = k.transpose(2, 0, 1, 3).reshape(-1, len_k, d_k)
    v = v.transpose(2, 0, 1, 3).reshape(-1, len_k, d_v)
    mask_rep = jnp.tile(mask, (n_head, 1, 1))
    scores = jnp.einsum("bqd,bkd->bqk", q, k) / np.power(d_k, 0.5)
    scores = jnp.where(mask_rep, -jnp.inf, scores)
    attn = jax.nn.softmax(scores, axis=2)
    out = jnp.einsum("bqk,bkd->bqd", attn, v)
    out = out.reshape(n_head, sz_b, len_q, d_v).transpose(1, 2, 0, 3).reshape(sz_b, len_q, -1)
    out = out @ p["w_fc"] + p["b_fc"]
    y = out + residual
    mean = jnp.mean(y, axis=-1, keepdims=True)
    var = jnp.mean((y - mean) ** 2, axis=-1, keepdims=True)
    out = (y - mean) / jnp.sqrt(var + 1e-5) * p["ln_g"] + p["ln_b"]
    return out, attn


def _ref_ffn(p, x):
    h = jnp.maximum(x @ p["w1"] + p["b1"], 0.0)
    o = h @ p["w2"] + p["b2"]
    y = o + x
    mean = jnp.mean(y, axis=-1, keepdims=True)
    var = jnp.mean((y - mean) ** 2, axis=-1, keepdims=True)
    return (y - mean) / jnp.sqrt(var + 1e-5) * p["ln_g"] + p["ln_b"]


def _ref_decoder_layer(params, dec_input, enc_output, non_pad_mask,
                       slf_attn_mask, dec_enc_attn_mask, n_head, d_k, d_v):
    o, a1 = _ref_mha(params["slf"], dec_input, dec_input, dec_input,
                     slf_attn_mask, n_head, d_k, d_v)
    o = o * non_pad_mask
    o, a2 = _ref_mha(params["enc"], o, enc_output, enc_output,
                     dec_enc_attn_mask, n_head, d_k, d_v)
    o = o * non_pad_mask
    o = _ref_ffn(params["ffn"], o)
    o = o * non_pad_mask
    return o, a1, a2


# ---------------------------- Parameter init ----------------------------

def init_params(key, d_model, d_inner, n_head, d_k, d_v):
    ks = iter(jax.random.split(key, 32))

    def nrm(shape, std):
        return std * jax.random.normal(next(ks), shape, jnp.float32)

    def mha_params():
        return {
            "w_qs": nrm((d_model, n_head * d_k), np.sqrt(2.0 / (d_model + d_k))),
            "b_qs": nrm((n_head * d_k,), 0.02),
            "w_ks": nrm((d_model, n_head * d_k), np.sqrt(2.0 / (d_model + d_k))),
            "b_ks": nrm((n_head * d_k,), 0.02),
            "w_vs": nrm((d_model, n_head * d_v), np.sqrt(2.0 / (d_model + d_v))),
            "b_vs": nrm((n_head * d_v,), 0.02),
            "w_fc": nrm((n_head * d_v, d_model), np.sqrt(2.0 / (n_head * d_v + d_model))),
            "b_fc": nrm((d_model,), 0.02),
            "ln_g": jnp.ones((d_model,), jnp.float32),
            "ln_b": jnp.zeros((d_model,), jnp.float32),
        }

    return {
        "slf": mha_params(),
        "enc": mha_params(),
        "ffn": {
            "w1": nrm((d_model, d_inner), np.sqrt(2.0 / (d_model + d_inner))),
            "b1": nrm((d_inner,), 0.02),
            "w2": nrm((d_inner, d_model), np.sqrt(2.0 / (d_model + d_inner))),
            "b2": nrm((d_model,), 0.02),
            "ln_g": jnp.ones((d_model,), jnp.float32),
            "ln_b": jnp.zeros((d_model,), jnp.float32),
        },
    }


# ---------------------------- Main ----------------------------

if __name__ == "__main__":
    d_model, d_inner, n_head, d_k, d_v = 32, 64, 2, 16, 16
    B, L = 2, 8

    key = jax.random.PRNGKey(0)
    k_par, k_dec, k_enc = jax.random.split(key, 3)

    params = init_params(k_par, d_model, d_inner, n_head, d_k, d_v)
    prep = prepare_decoder_params(params, n_head, d_k, d_v)

    dec_input = jax.random.normal(k_dec, (B, L, d_model), jnp.float32)
    enc_output = jax.random.normal(k_enc, (B, L, d_model), jnp.float32)

    # non_pad_mask: (B, L, 1); last decoder position of batch 1 is padding.
    non_pad_mask = jnp.ones((B, L, 1), jnp.float32).at[1, L - 1, 0].set(0.0)
    # self-attention mask: causal (True = masked).
    slf_attn_mask = jnp.broadcast_to(jnp.triu(jnp.ones((L, L), bool), 1), (B, L, L))
    # dec-enc attention mask: mask out last two encoder positions for batch 1.
    dec_enc_attn_mask = jnp.zeros((B, L, L), bool).at[1, :, L - 2:].set(True)

    out, slf_attn, enc_attn = decoder_layer_forward(
        prep, dec_input, enc_output, non_pad_mask,
        slf_attn_mask, dec_enc_attn_mask, n_head, d_k, d_v)
    jax.block_until_ready((out, slf_attn, enc_attn))

    ref_out, ref_slf, ref_enc = _ref_decoder_layer(
        params, dec_input, enc_output, non_pad_mask,
        slf_attn_mask, dec_enc_attn_mask, n_head, d_k, d_v)

    # Tolerance sized for bf16 MXU operands compounded across three chained
    # sublayers (self-attn -> cross-attn -> FFN); the reference is full f32.
    np.testing.assert_allclose(np.asarray(out), np.asarray(ref_out), atol=5e-2, rtol=5e-2)
    np.testing.assert_allclose(np.asarray(slf_attn), np.asarray(ref_slf), atol=5e-2, rtol=5e-2)
    np.testing.assert_allclose(np.asarray(enc_attn), np.asarray(ref_enc), atol=5e-2, rtol=5e-2)

    print("KERNEL_OK")
</pallas_src>

<mosaic_0001>
module attributes {stable_mosaic.version = 11 : i64} {
  func.func @_proj_kernel(%arg0: i32, %arg1: memref<16x32xf32, #tpu.memory_space<vmem>>, %arg2: memref<32x96xbf16, #tpu.memory_space<vmem>>, %arg3: memref<1x96xf32, #tpu.memory_space<vmem>>, %arg4: memref<16x96xbf16, #tpu.memory_space<vmem>>) attributes {dimension_semantics = [#tpu.dimension_semantics<parallel>], iteration_bounds = array<i64: 1>, scalar_prefetch = 0 : i64, scratch_operands = 0 : i64, tpu.core_type = #tpu.core_type<tc>, window_params = [{transform_indices = @transform_0, window_bounds = array<i64: 16, 32>}, {pipeline_mode = #tpu.pipeline_mode<synchronous>, transform_indices = @transform_1, window_bounds = array<i64: 32, 96>}, {pipeline_mode = #tpu.pipeline_mode<synchronous>, transform_indices = @transform_2, window_bounds = array<i64: 1, 96>}, {transform_indices = @transform_3, window_bounds = array<i64: 16, 96>}]} {
    %c0 = arith.constant 0 : index
    %c0_0 = arith.constant 0 : index
    %0 = vector.load %arg1[%c0, %c0_0] : memref<16x32xf32, #tpu.memory_space<vmem>>, vector<16x32xf32>
    %1 = arith.truncf %0 : vector<16x32xf32> to vector<16x32xbf16>
    %c0_1 = arith.constant 0 : index
    %c0_2 = arith.constant 0 : index
    %2 = vector.load %arg2[%c0_1, %c0_2] : memref<32x96xbf16, #tpu.memory_space<vmem>>, vector<32x96xbf16>
    %cst = arith.constant dense<0.000000e+00> : vector<16x96xf32>
    %3 = tpu.matmul %1, %2, %cst {dimension_numbers = #tpu.dot_dimension_numbers<[1], [0], [0], [1], [0, 0, 1, 1], [], []>} : vector<16x32xbf16>, vector<32x96xbf16>, vector<16x96xf32> -> vector<16x96xf32>
    %c0_3 = arith.constant 0 : index
    %c0_4 = arith.constant 0 : index
    %4 = vector.load %arg3[%c0_3, %c0_4] : memref<1x96xf32, #tpu.memory_space<vmem>>, vector<1x96xf32>
    %5 = vector.broadcast %4 : vector<1x96xf32> to vector<16x96xf32>
    %6 = arith.addf %3, %5 : vector<16x96xf32>
    %7 = arith.truncf %6 : vector<16x96xf32> to vector<16x96xbf16>
    %c0_5 = arith.constant 0 : index
    %c0_6 = arith.constant 0 : index
    %8 = vector.load %arg4[%c0_5, %c0_6] : memref<16x96xbf16, #tpu.memory_space<vmem>>, vector<16x96xbf16>
    tpu.vector_store %arg4[%c0_5, %c0_6], %7 {strides = array<i32>} : memref<16x96xbf16, #tpu.memory_space<vmem>>, vector<16x96xbf16>,
    return
  }
  func.func @transform_0(%arg0: i32) -> (i32, i32) {
    %c0_i32 = arith.constant 0 : i32
    %c0_i32_0 = arith.constant 0 : i32
    return %arg0, %c0_i32 : i32, i32
  }
  func.func @transform_1(%arg0: i32) -> (i32, i32) {
    %c0_i32 = arith.constant 0 : i32
    %c0_i32_0 = arith.constant 0 : i32
    %c0_i32_1 = arith.constant 0 : i32
    return %c0_i32, %c0_i32_0 : i32, i32
  }
  func.func @transform_2(%arg0: i32) -> (i32, i32) {
    %c0_i32 = arith.constant 0 : i32
    %c0_i32_0 = arith.constant 0 : i32
    %c0_i32_1 = arith.constant 0 : i32
    return %c0_i32, %c0_i32_0 : i32, i32
  }
  func.func @transform_3(%arg0: i32) -> (i32, i32) {
    %c0_i32 = arith.constant 0 : i32
    %c0_i32_0 = arith.constant 0 : i32
    return %arg0, %c0_i32 : i32, i32
  }
}

</mosaic_0001>

<bundles_post_ra>
// kernel: tpu_custom_call.1
= control target key start
LH: loop header
LB: loop body
LE: loop exit
PB: predicated region body
PF: predicated region fallthrough
CT: control target
= control target key end

     0   :  { %8 = vsyncpa [#allocation3], 0  ;;  %s287_s0 = inlined_call_operand.hbm [shape: f32[16,32], index: 0, kind: input, shape index: {}]   ;;  %s288_s1 = inlined_call_operand.hbm [shape: bf16[32,96], index: 1, kind: input, shape index: {}]   ;;  %s289_s2 = inlined_call_operand.vmem [shape: f32[1,96], index: 2, kind: input, shape index: {}]   ;;  %s290_s3 = inlined_call_operand.hbm [shape: bf16[16,96], index: 3, kind: output, shape index: {}]  }
   0x1   :  { %9 = vsyncpa [#allocation6], 0 }
   0x2   :  { %10 = vsyncpa [#allocation4], 0  ;;  %s240_s12 = smov [#allocation2]  }
   0x3   :  { %s16_s13 = sshll.u32 %s240_s12, 4  ;;  %s17_s13 = int_to_ptr.vmem [resolvable:$true] %s16_s13 }
   0x4   :  { %s182_s14 = scalar_lea.vmem %s17_s13, 256  ;;  %p187_p1 = scmp.lt.s32.totalorder %s17_s13, %s17_s13 }
   0x5   :  { %p183_p0 = scmp.ne.s32.totalorder %s17_s13, %s182_s14  ;;  %p188_p2 = scmp.lt.s32.totalorder %s182_s14, %s182_s14 }
   0x7   :  { %p189_p3 = por %p188_p2, %p187_p1 }
   0x9   :  { %p190_p4 = pnand %p189_p3, %p183_p0 }
   0xb   :  { %193 = shalt.err (!%p190_p4)
}
   0xc   :  { %s241_s15 = smov 128   ;;  %s242_s16 = smov 8  }
   0xd   :  { %22 = dma.hbm_to_vmem [thread:$0]  %s287_s0, 256, %s17_s13, [#allocation3], %s241_s15, %s241_s15, %s242_s16  }
   0xe   :  { %s243_s19 = smov [#allocation5]  }
   0xf   :  { %s28_s20 = sshll.u32 %s243_s19, 4  ;;  %s29_s20 = int_to_ptr.vmem [resolvable:$true] %s28_s20 }
  0x10   :  { %s202_s21 = scalar_lea.vmem %s29_s20, 256  ;;  %p207_p6 = scmp.lt.s32.totalorder %s29_s20, %s29_s20 }
  0x11   :  { %p203_p5 = scmp.ne.s32.totalorder %s29_s20, %s202_s21  ;;  %p208_p7 = scmp.lt.s32.totalorder %s202_s21, %s202_s21 }
  0x13   :  { %p209_p8 = por %p208_p7, %p207_p6 }
  0x15   :  { %p210_p9 = pnand %p209_p8, %p203_p5 }
  0x17   :  { %213 = shalt.err (!%p210_p9)
}
  0x18   :  { %s244_s22 = smov 64   ;;  %s245_s23 = smov 4  }
  0x19   :  { %34 = dma.hbm_to_vmem [thread:$0]  %s288_s1, 256, %s29_s20, [#allocation6], %s244_s22, %s244_s22, %s245_s23  }
  0x1a   :  { %234 = dma.done.wait [#allocation3], 256  }
  0x1b   :  { %235 = vsyncadd [#allocation3], 4294967040 }
  0x1c   :  { %236 = dma.done.wait [#allocation6], 256  }
  0x1d   :  { %237 = vsyncadd [#allocation6], 4294967040  ;;  %v246_v0 = vmov 0.0   ;;  %vm247_vm0 = vmmov 0   ;;  %v172_v1 = vld [vmem:[#allocation5 + $0x8] sm:$0xff]   ;;  %v173_v2 = vld [vmem:[#allocation5] sm:$0xff]  }
  0x1e   :  { %155 = vmatprep.subr.bf16.mxu0 %v246_v0  ;;  %159 = vmatprep.mubr.msk.bf16.mxu0 %vm247_vm0, %v246_v0  ;;  %v44_v3 = vld [vmem:[#allocation2] sm:$0xff]  ;;  %v45_v4 = vld [vmem:[#allocation2 + $0x8] sm:$0xff]  ;;  %vm70_vm1 = vcmask 261120   ;;  %vm123_vm2 = vcmask 781312   ;;  %s248_s26 = smov [#allocation7]  }
  0x1f   :  { %156 = vmatpush3.bf16.msra.mxu0 %v172_v1  ;;  %v46_v5 = vpack.c.bf16 %v45_v4, %v44_v3  ;;  %v144_v6 = vld [vmem:[%s289_s2] ss:$0 sm:$0xff]  ;;  %s131_s27 = sshll.u32 %s248_s26, 4  ;;  %s132_s27 = int_to_ptr.vmem [resolvable:$true] %s131_s27 }
  0x20   :  { %157 = vmatprep.subr.bf16.mxu0 %v246_v0  ;;  %s214_s28 = scalar_lea.vmem %s132_s27, 128  ;;  %p219_p11 = scmp.lt.s32.totalorder %s132_s27, %s132_s27 }
  0x21   :  { %p215_p10 = scmp.ne.s32.totalorder %s132_s27, %s214_s28  ;;  %p220_p12 = scmp.lt.s32.totalorder %s214_s28, %s214_s28 }
  0x23   :  { %158 = vmatpush3.bf16.msra.mxu0 %v173_v2  ;;  %p221_p13 = por %p220_p12, %p219_p11 }
  0x25   :  { %p222_p0 = pnand %p221_p13, %p215_p10 }
  0x26   :  { %160 = vmatmul.mubr.msk.bf16.vlgmr.msra.gmra.mxu0 %vm70_vm1, %v46_v5 }
  0xe6   :  { %v108_v7 = vpop.f32.mrf.mxu0 }
  0xe7   :  { %v109_v8 = vadd.f32 %v144_v6, %v108_v7 }
  0xe8   :  { %v161_v9 = vpop.f32.mrf.mxu0 }
  0xe9   :  { %v150_v10 = vpack.c.bf16 %v109_v8, %v109_v8 }
  0xea   :  { %v111_v11 = vpop.f32.mrf.mxu0 }
  0xeb   :  { %v112_v12 = vadd.f32 %v144_v6, %v111_v11  ;;  %124 = vst.msk [vmem:[#allocation7] sm:$0xf] %vm123_vm2, %v150_v10 }
  0xec   :  { %v162_v13 = vpop.f32.mrf.mxu0 }
  0xed   :  { %v151_v14 = vpack.c.bf16 %v112_v12, %v112_v12 }
  0xef   :  { %125 = vst.msk [vmem:[#allocation7 + $0x4] sm:$0xf] %vm123_vm2, %v151_v14 }
  0xf0   :  { %225 = shalt.err (!%p222_p0)
}
  0xf1   :  { %137 = dma.vmem_to_hbm [thread:$0]  %s132_s27, 128, %s290_s3, [#allocation4], %s244_s22, %s244_s22, %s245_s23  }
  0xf2   :  { %238 = dma.done.wait [#allocation4], 128  }
  0xf3   :  { %239 = vsyncadd [#allocation4], 4294967168 }
  0xf4   :  { %141 = vsyncpa [#allocation3], 1 }
  0xf5   :  { %142 = vsyncpa [#allocation6], 1 }
  0xf6   :  { %143 = vsyncpa [#allocation4], 1 }

</bundles_post_ra>
